<compile_context>
chip_gen: v7x
topology: tpu7x:2x2x1
jax: 0.10.0
libtpu: 0.0.40
codegen_flags: <defaults>
</compile_context>

<pallas_src>
import functools

import jax
import jax.numpy as jnp
from jax.experimental import pallas as pl
from jax.experimental.pallas import tpu as pltpu


# ----------------------------------------------------------------------------
# Fully-fused Generator forward kernel
# ----------------------------------------------------------------------------
def _fused_generator_kernel(*refs, n_layers):
    """refs = (u, w_0, sh_0, w_1, sh_1, ..., w_{L-1}, sh_{L-1}, o_ref)

    u = [z | y] packed input.  Layers 0..L-2 are Linear(+folded BN)+ReLU
    (layers 0/1 carry block-diagonal weights implementing the two branches);
    layer L-1 is the final Linear + Sigmoid (lane-padded to 128 columns).
    """
    u_ref = refs[0]
    o_ref = refs[-1]
    wrefs = refs[1:-1]

    x = u_ref[...].astype(jnp.float32)
    for li in range(n_layers):
        w_ref = wrefs[2 * li]
        sh_ref = wrefs[2 * li + 1]
        # bf16 operands on the MXU, f32 accumulation; bias/activation in f32.
        x = (
            jnp.dot(
                x.astype(w_ref.dtype),
                w_ref[...],
                preferred_element_type=jnp.float32,
            )
            + sh_ref[...]
        )
        if li + 1 < n_layers:
            x = jnp.maximum(x, 0.0)          # ReLU (Dropout == identity, eval)
        else:
            x = jax.nn.sigmoid(x)            # final activation
    o_ref[...] = x.astype(o_ref.dtype)


def generator_forward(layers, z, y, *, out_dim, batch_tile=None):
    """Single fused Pallas kernel for the full Generator forward pass.

    `layers` is a list of (weight, shift) pairs produced by
    `init_generator_params` (branch layers packed block-diagonally, BN folded,
    final layer lane-padded).
    """
    u = jnp.concatenate([z.astype(jnp.float32), y.astype(jnp.float32)], axis=1)
    flat = [a for pair in layers for a in pair]
    n_layers = len(layers)
    B, d_in = u.shape
    out_pad = layers[-1][0].shape[1]
    kernel = functools.partial(_fused_generator_kernel, n_layers=n_layers)

    if batch_tile is None or B <= batch_tile:
        # Small batch: grid=() — inputs, weights and output are single VMEM
        # blocks; intermediates never leave vregs.
        out_p = pl.pallas_call(
            kernel,
            out_shape=jax.ShapeDtypeStruct((B, out_pad), jnp.float32),
            in_specs=[pl.BlockSpec(memory_space=pltpu.MemorySpace.VMEM)]
            * (1 + len(flat)),
            out_specs=pl.BlockSpec(memory_space=pltpu.MemorySpace.VMEM),
        )(u, *flat)
        return out_p[:, :out_dim]

    # Large-batch path: tile over rows only; weights are full-extent blocks
    # with a constant block index (resident across grid steps); batch axis is
    # "parallel" so v7x's two TensorCores can split it.  Use an even number
    # of grid steps (B // batch_tile) on v7x to keep both cores busy.
    if B % batch_tile != 0:
        raise ValueError(f"batch {B} must be a multiple of batch_tile={batch_tile}")
    tm = batch_tile
    in_specs = [pl.BlockSpec((tm, d_in), lambda i: (i, 0))]
    in_specs += [pl.BlockSpec(p.shape, lambda i: (0, 0)) for p in flat]
    out_p = pl.pallas_call(
        kernel,
        out_shape=jax.ShapeDtypeStruct((B, out_pad), jnp.float32),
        grid_spec=pltpu.PrefetchScalarGridSpec(
            num_scalar_prefetch=0,
            grid=(B // tm,),
            in_specs=in_specs,
            out_specs=pl.BlockSpec((tm, out_pad), lambda i: (i, 0)),
        ),
        compiler_params=pltpu.CompilerParams(
            dimension_semantics=("parallel",),
            # Explicit VMEM budget: bf16 weights + a few (tm, 128) f32 blocks
            # stay far below this even on v7x (64 MiB physical VMEM).
            vmem_limit_bytes=32 * 1024 * 1024,
        ),
    )(u, *flat)
    return out_p[:, :out_dim]


# ----------------------------------------------------------------------------
# Parameter construction (mimics nn.Linear / nn.BatchNorm1d, eval mode),
# with BN folded into the weights, z/y branch layers packed block-diagonally,
# the final layer zero-padded to 128 output lanes, and weights cast to bf16.
# ----------------------------------------------------------------------------
def _init_linear(key, in_dim, out_dim):
    kw, kb = jax.random.split(key)
    bound = 1.0 / jnp.sqrt(in_dim)
    w = jax.random.uniform(kw, (in_dim, out_dim), jnp.float32, -bound, bound)
    b = jax.random.uniform(kb, (out_dim,), jnp.float32, -bound, bound)
    return w, b


def _init_bn(key, dim):
    kg, kb, km, kv = jax.random.split(key, 4)
    gamma = 1.0 + 0.1 * jax.random.normal(kg, (dim,), jnp.float32)
    beta = 0.1 * jax.random.normal(kb, (dim,), jnp.float32)
    running_mean = 0.1 * jax.random.normal(km, (dim,), jnp.float32)
    running_var = 1.0 + 0.1 * jax.random.uniform(kv, (dim,), jnp.float32)
    return gamma, beta, running_mean, running_var


def _fold(w, b, bn=None, eps=1e-5):
    """Fold eval-mode BN into the Linear: returns (W', shift[1, out])."""
    if bn is None:
        return w, b.reshape(1, -1)
    gamma, beta, mean, var = bn
    scale = gamma / jnp.sqrt(var + eps)
    return w * scale[None, :], ((b - mean) * scale + beta).reshape(1, -1)


def _block_diag(wa, wb):
    ia, oa = wa.shape
    ib, ob = wb.shape
    w = jnp.zeros((ia + ib, oa + ob), wa.dtype)
    w = w.at[:ia, :oa].set(wa)
    w = w.at[ia:, oa:].set(wb)
    return w


def init_generator_params(key, dim_z, dim_y, out_dim, dims_h,
                          weight_dtype=jnp.bfloat16):
    hidden_z = dims_h[0] // 2
    hidden_y = dims_h[0] - hidden_z
    n_hidden = len(dims_h) - 1
    keys = iter(jax.random.split(key, 9 + 2 * n_hidden + 1))

    def lin_bn(in_dim, o_dim):
        w, b = _init_linear(next(keys), in_dim, o_dim)
        bn = _init_bn(next(keys), o_dim)
        return (w, b, bn)

    # Raw ("PyTorch layout") parameters — used only by the un-fused reference.
    raw = {
        "linear_z": [lin_bn(dim_z, hidden_z), lin_bn(hidden_z, hidden_z)],
        "linear_y": [lin_bn(dim_y, hidden_y), lin_bn(hidden_y, hidden_y)],
        "hidden": [lin_bn(dims_h[i], dims_h[i + 1]) for i in range(n_hidden)],
        "final": _init_linear(next(keys), dims_h[-1], out_dim),
    }

    # ---- packed layers for the fused kernel ----
    layers = []
    # Branch layers: block-diagonal [z | y] packing (torch.cat([z, y], 1)
    # puts z first, so the z block sits in the top-left).
    for lz, ly in zip(raw["linear_z"], raw["linear_y"]):
        wz, shz = _fold(*lz)
        wy, shy = _fold(*ly)
        layers.append((_block_diag(wz, wy), jnp.concatenate([shz, shy], axis=1)))
    # Hidden layers (first one uses the original, un-split weight).
    for w, b, bn in raw["hidden"]:
        layers.append(_fold(w, b, bn))
    # Final layer, zero-padded to a lane-dense (multiple of 128) output width.
    wf, bf = raw["final"]
    wf, shf = _fold(wf, bf, None)
    out_pad = ((out_dim + 127) // 128) * 128
    wf_p = jnp.zeros((wf.shape[0], out_pad), jnp.float32).at[:, :out_dim].set(wf)
    shf_p = jnp.zeros((1, out_pad), jnp.float32).at[:, :out_dim].set(shf)
    layers.append((wf_p, shf_p))

    # bf16 weights (MXU-native), f32 shifts.
    layers = [(w.astype(weight_dtype), sh.astype(jnp.float32)) for w, sh in layers]
    return layers, raw


# ----------------------------------------------------------------------------
# References
# ----------------------------------------------------------------------------
def generator_forward_packed_ref(layers, z, y, *, out_dim):
    """Pure-JAX mirror of the fused kernel math (same bf16 quantization)."""
    x = jnp.concatenate([z, y], axis=1).astype(jnp.float32)
    for li, (w, sh) in enumerate(layers):
        x = jnp.dot(x.astype(w.dtype), w, preferred_element_type=jnp.float32) + sh
        x = jnp.maximum(x, 0.0) if li + 1 < len(layers) else jax.nn.sigmoid(x)
    return x[:, :out_dim]


def generator_forward_torch_ref(raw, z, y, eps=1e-5):
    """Faithful f32 eval-mode forward of the PyTorch module (no folding/packing)."""
    def lin_bn_relu(x, w, b, bn):
        x = x @ w + b
        gamma, beta, mean, var = bn
        x = (x - mean) / jnp.sqrt(var + eps) * gamma + beta
        return jnp.maximum(x, 0.0)

    hz = z
    for w, b, bn in raw["linear_z"]:
        hz = lin_bn_relu(hz, w, b, bn)
    hy = y
    for w, b, bn in raw["linear_y"]:
        hy = lin_bn_relu(hy, w, b, bn)
    x = jnp.concatenate([hz, hy], axis=1)
    for w, b, bn in raw["hidden"]:
        x = lin_bn_relu(x, w, b, bn)      # Dropout == identity in eval mode
    wf, bf = raw["final"]
    return jax.nn.sigmoid(x @ wf + bf)


if __name__ == "__main__":
    # Small shapes: batch=8, dim_z=16, dim_y=8, dims_h=[32, 64, 64], out_dim=32
    B, DIM_Z, DIM_Y, OUT_DIM = 8, 16, 8, 32
    DIMS_H = [32, 64, 64]

    root = jax.random.PRNGKey(0)
    k_p, k_z, k_y = jax.random.split(root, 3)
    layers, raw = init_generator_params(k_p, DIM_Z, DIM_Y, OUT_DIM, DIMS_H)
    z = jax.random.normal(k_z, (B, DIM_Z), jnp.float32)
    y = jax.random.normal(k_y, (B, DIM_Y), jnp.float32)

    fwd = jax.jit(functools.partial(generator_forward, out_dim=OUT_DIM))
    out = jax.block_until_ready(fwd(layers, z, y))
    assert out.shape == (B, OUT_DIM), out.shape

    # Kernel vs identical packed/bf16 math (tight).
    ref_packed = generator_forward_packed_ref(layers, z, y, out_dim=OUT_DIM)
    err_p = jnp.max(jnp.abs(out - ref_packed))
    assert jnp.allclose(out, ref_packed, atol=2e-3, rtol=2e-3), f"packed err {err_p}"

    # Kernel vs faithful f32 PyTorch-layout reference (loose: bf16 weights).
    ref_torch = generator_forward_torch_ref(raw, z, y)
    err_t = jnp.max(jnp.abs(out - ref_torch))
    assert jnp.allclose(out, ref_torch, atol=5e-2, rtol=0.0), f"torch err {err_t}"

    # Larger-batch, row-tiled ("parallel") path: tile=256, grid=2 (even, >=2).
    B2 = 512
    z2 = jax.random.normal(jax.random.PRNGKey(1), (B2, DIM_Z), jnp.float32)
    y2 = jax.random.normal(jax.random.PRNGKey(2), (B2, DIM_Y), jnp.float32)
    fwd_tiled = jax.jit(
        functools.partial(generator_forward, out_dim=OUT_DIM, batch_tile=256)
    )
    out2 = jax.block_until_ready(fwd_tiled(layers, z2, y2))
    assert out2.shape == (B2, OUT_DIM), out2.shape
    ref2 = generator_forward_packed_ref(layers, z2, y2, out_dim=OUT_DIM)
    err2 = jnp.max(jnp.abs(out2 - ref2))
    assert jnp.allclose(out2, ref2, atol=2e-3, rtol=2e-3), f"tiled err {err2}"

    print("KERNEL_OK")
</pallas_src>

<mosaic_0001>
module attributes {stable_mosaic.version = 11 : i64} {
  func.func @_fused_generator_kernel(%arg0: memref<8x24xf32, #tpu.memory_space<vmem>>, %arg1: memref<24x32xbf16, #tpu.memory_space<vmem>>, %arg2: memref<1x32xf32, #tpu.memory_space<vmem>>, %arg3: memref<32x32xbf16, #tpu.memory_space<vmem>>, %arg4: memref<1x32xf32, #tpu.memory_space<vmem>>, %arg5: memref<32x64xbf16, #tpu.memory_space<vmem>>, %arg6: memref<1x64xf32, #tpu.memory_space<vmem>>, %arg7: memref<64x64xbf16, #tpu.memory_space<vmem>>, %arg8: memref<1x64xf32, #tpu.memory_space<vmem>>, %arg9: memref<64x128xbf16, #tpu.memory_space<vmem>>, %arg10: memref<1x128xf32, #tpu.memory_space<vmem>>, %arg11: memref<8x128xf32, #tpu.memory_space<vmem>>) attributes {dimension_semantics = [], scalar_prefetch = 0 : i64, scratch_operands = 0 : i64, tpu.core_type = #tpu.core_type<tc>} {
    %c0 = arith.constant 0 : index
    %c0_0 = arith.constant 0 : index
    %0 = vector.load %arg0[%c0, %c0_0] : memref<8x24xf32, #tpu.memory_space<vmem>>, vector<8x24xf32>
    %1 = arith.truncf %0 : vector<8x24xf32> to vector<8x24xbf16>
    %c0_1 = arith.constant 0 : index
    %c0_2 = arith.constant 0 : index
    %2 = vector.load %arg1[%c0_1, %c0_2] : memref<24x32xbf16, #tpu.memory_space<vmem>>, vector<24x32xbf16>
    %cst = arith.constant dense<0.000000e+00> : vector<8x32xf32>
    %3 = tpu.matmul %1, %2, %cst {dimension_numbers = #tpu.dot_dimension_numbers<[1], [0], [0], [1], [0, 0, 1, 1], [], []>} : vector<8x24xbf16>, vector<24x32xbf16>, vector<8x32xf32> -> vector<8x32xf32>
    %c0_3 = arith.constant 0 : index
    %c0_4 = arith.constant 0 : index
    %4 = vector.load %arg2[%c0_3, %c0_4] : memref<1x32xf32, #tpu.memory_space<vmem>>, vector<1x32xf32>
    %5 = vector.broadcast %4 : vector<1x32xf32> to vector<8x32xf32>
    %6 = arith.addf %3, %5 : vector<8x32xf32>
    %cst_5 = arith.constant 0.000000e+00 : f32
    %7 = vector.broadcast %cst_5 : f32 to vector<8x32xf32>
    %8 = arith.maximumf %6, %7 : vector<8x32xf32>
    %9 = arith.truncf %8 : vector<8x32xf32> to vector<8x32xbf16>
    %c0_6 = arith.constant 0 : index
    %c0_7 = arith.constant 0 : index
    %10 = vector.load %arg3[%c0_6, %c0_7] : memref<32x32xbf16, #tpu.memory_space<vmem>>, vector<32x32xbf16>
    %cst_8 = arith.constant dense<0.000000e+00> : vector<8x32xf32>
    %11 = tpu.matmul %9, %10, %cst_8 {dimension_numbers = #tpu.dot_dimension_numbers<[1], [0], [0], [1], [0, 0, 1, 1], [], []>} : vector<8x32xbf16>, vector<32x32xbf16>, vector<8x32xf32> -> vector<8x32xf32>
    %c0_9 = arith.constant 0 : index
    %c0_10 = arith.constant 0 : index
    %12 = vector.load %arg4[%c0_9, %c0_10] : memref<1x32xf32, #tpu.memory_space<vmem>>, vector<1x32xf32>
    %13 = vector.broadcast %12 : vector<1x32xf32> to vector<8x32xf32>
    %14 = arith.addf %11, %13 : vector<8x32xf32>
    %cst_11 = arith.constant 0.000000e+00 : f32
    %15 = vector.broadcast %cst_11 : f32 to vector<8x32xf32>
    %16 = arith.maximumf %14, %15 : vector<8x32xf32>
    %17 = arith.truncf %16 : vector<8x32xf32> to vector<8x32xbf16>
    %c0_12 = arith.constant 0 : index
    %c0_13 = arith.constant 0 : index
    %18 = vector.load %arg5[%c0_12, %c0_13] : memref<32x64xbf16, #tpu.memory_space<vmem>>, vector<32x64xbf16>
    %cst_14 = arith.constant dense<0.000000e+00> : vector<8x64xf32>
    %19 = tpu.matmul %17, %18, %cst_14 {dimension_numbers = #tpu.dot_dimension_numbers<[1], [0], [0], [1], [0, 0, 1, 1], [], []>} : vector<8x32xbf16>, vector<32x64xbf16>, vector<8x64xf32> -> vector<8x64xf32>
    %c0_15 = arith.constant 0 : index
    %c0_16 = arith.constant 0 : index
    %20 = vector.load %arg6[%c0_15, %c0_16] : memref<1x64xf32, #tpu.memory_space<vmem>>, vector<1x64xf32>
    %21 = vector.broadcast %20 : vector<1x64xf32> to vector<8x64xf32>
    %22 = arith.addf %19, %21 : vector<8x64xf32>
    %cst_17 = arith.constant 0.000000e+00 : f32
    %23 = vector.broadcast %cst_17 : f32 to vector<8x64xf32>
    %24 = arith.maximumf %22, %23 : vector<8x64xf32>
    %25 = arith.truncf %24 : vector<8x64xf32> to vector<8x64xbf16>
    %c0_18 = arith.constant 0 : index
    %c0_19 = arith.constant 0 : index
    %26 = vector.load %arg7[%c0_18, %c0_19] : memref<64x64xbf16, #tpu.memory_space<vmem>>, vector<64x64xbf16>
    %cst_20 = arith.constant dense<0.000000e+00> : vector<8x64xf32>
    %27 = tpu.matmul %25, %26, %cst_20 {dimension_numbers = #tpu.dot_dimension_numbers<[1], [0], [0], [1], [0, 0, 1, 1], [], []>} : vector<8x64xbf16>, vector<64x64xbf16>, vector<8x64xf32> -> vector<8x64xf32>
    %c0_21 = arith.constant 0 : index
    %c0_22 = arith.constant 0 : index
    %28 = vector.load %arg8[%c0_21, %c0_22] : memref<1x64xf32, #tpu.memory_space<vmem>>, vector<1x64xf32>
    %29 = vector.broadcast %28 : vector<1x64xf32> to vector<8x64xf32>
    %30 = arith.addf %27, %29 : vector<8x64xf32>
    %cst_23 = arith.constant 0.000000e+00 : f32
    %31 = vector.broadcast %cst_23 : f32 to vector<8x64xf32>
    %32 = arith.maximumf %30, %31 : vector<8x64xf32>
    %33 = arith.truncf %32 : vector<8x64xf32> to vector<8x64xbf16>
    %c0_24 = arith.constant 0 : index
    %c0_25 = arith.constant 0 : index
    %34 = vector.load %arg9[%c0_24, %c0_25] : memref<64x128xbf16, #tpu.memory_space<vmem>>, vector<64x128xbf16>
    %cst_26 = arith.constant dense<0.000000e+00> : vector<8x128xf32>
    %35 = tpu.matmul %33, %34, %cst_26 {dimension_numbers = #tpu.dot_dimension_numbers<[1], [0], [0], [1], [0, 0, 1, 1], [], []>} : vector<8x64xbf16>, vector<64x128xbf16>, vector<8x128xf32> -> vector<8x128xf32>
    %c0_27 = arith.constant 0 : index
    %c0_28 = arith.constant 0 : index
    %36 = vector.load %arg10[%c0_27, %c0_28] : memref<1x128xf32, #tpu.memory_space<vmem>>, vector<1x128xf32>
    %37 = vector.broadcast %36 : vector<1x128xf32> to vector<8x128xf32>
    %38 = arith.addf %35, %37 : vector<8x128xf32>
    %39 = arith.negf %38 : vector<8x128xf32>
    %40 = math.exp %39 : vector<8x128xf32>
    %cst_29 = arith.constant 1.000000e+00 : f32
    %41 = vector.broadcast %cst_29 : f32 to vector<8x128xf32>
    %42 = arith.addf %41, %40 : vector<8x128xf32>
    %43 = arith.divf %41, %42 : vector<8x128xf32>
    %c0_30 = arith.constant 0 : index
    %c0_31 = arith.constant 0 : index
    %44 = vector.load %arg11[%c0_30, %c0_31] : memref<8x128xf32, #tpu.memory_space<vmem>>, vector<8x128xf32>
    tpu.vector_store %arg11[%c0_30, %c0_31], %43 {strides = array<i32>} : memref<8x128xf32, #tpu.memory_space<vmem>>, vector<8x128xf32>,
    return
  }
}

</mosaic_0001>

<bundles_post_ra>
// kernel: generator_forward.1
= control target key start
LH: loop header
LB: loop body
LE: loop exit
PB: predicated region body
PF: predicated region fallthrough
CT: control target
= control target key end

     0   :  { %16 = vsyncpa [#allocation3], 0  ;;  %s1071_s0 = inlined_call_operand.vmem [shape: f32[8,24], index: 0, kind: input, shape index: {}]   ;;  %s1072_s1 = inlined_call_operand.vmem [shape: bf16[24,32], index: 1, kind: input, shape index: {}]   ;;  %s1073_s2 = inlined_call_operand.vmem [shape: f32[1,32], index: 2, kind: input, shape index: {}]   ;;  %s1074_s3 = inlined_call_operand.hbm [shape: bf16[32,32], index: 3, kind: input, shape index: {}]   ;;  %s1075_s4 = inlined_call_operand.hbm [shape: f32[1,32], index: 4, kind: input, shape index: {}]   ;;  %s1076_s5 = inlined_call_operand.hbm [shape: bf16[32,64], index: 5, kind: input, shape index: {}]   ;;  %s1077_s6 = inlined_call_operand.hbm [shape: f32[1,64], index: 6, kind: input, shape index: {}]   ;;  %s1078_s7 = inlined_call_operand.vmem [shape: bf16[64,64], index: 7, kind: input, shape index: {}]   ;;  %s1079_s8 = inlined_call_operand.hbm [shape: f32[1,64], index: 8, kind: input, shape index: {}]   ;;  %s1080_s9 = inlined_call_operand.hbm [shape: bf16[64,128], index: 9, kind: input, shape index: {}]   ;;  %s1081_s10 = inlined_call_operand.hbm [shape: f32[1,128], index: 10, kind: input, shape index: {}]   ;;  %s1082_s11 = inlined_call_operand.hbm [shape: f32[8,128], index: 11, kind: output, shape index: {}]  }
   0x1   :  { %17 = vsyncpa [#allocation6], 0 }
   0x2   :  { %18 = vsyncpa [#allocation9], 0 }
   0x3   :  { %19 = vsyncpa [#allocation12], 0 }
   0x4   :  { %20 = vsyncpa [#allocation4], 0  ;;  %s835_s17 = smov [#allocation5]   ;;  %s836_s19 = smov [#allocation8]  }
   0x5   :  { %s45_s18 = sshll.u32 %s835_s17, 4  ;;  %s67_s20 = sshll.u32 %s836_s19, 4  ;;  %s46_s18 = int_to_ptr.vmem [resolvable:$true] %s45_s18  ;;  %s68_s20 = int_to_ptr.vmem [resolvable:$true] %s67_s20 }
   0x6   :  { %s649_s23 = scalar_lea.hbm %s1075_s4, 16 }
   0x7   :  { %p650_p0 = scmp.ne.s32.totalorder %s1075_s4, %s649_s23  ;;  %p653_p1 = scmp.lt.u32.totalorder %s649_s23, %s1075_s4 }
   0x9   :  { %p655_p2 = pnand %p653_p1, %p650_p0 }
   0xb   :  { %658 = shalt.err (!%p655_p2)
}
   0xc   :  { %s659_s28 = scalar_lea.vmem %s46_s18, 16  ;;  %s663_s29 = scalar_lea.vmem %s46_s18, 32 }
   0xd   :  { %p660_p3 = scmp.ne.s32.totalorder %s46_s18, %s659_s28  ;;  %p664_p4 = scmp.lt.s32.totalorder %s46_s18, %s46_s18 }
   0xe   :  { %p665_p5 = scmp.lt.s32.totalorder %s663_s29, %s659_s28 }
  0x10   :  { %p666_p6 = por %p665_p5, %p664_p4 }
  0x12   :  { %p667_p7 = pnand %p666_p6, %p660_p3 }
  0x14   :  { %670 = shalt.err (!%p667_p7)
}
  0x15   :  { %48 = dma.hbm_to_vmem [thread:$0]  %s1075_s4, 16, %s46_s18, [#allocation6]  }
  0x16   :  { %s671_s15 = scalar_lea.hbm %s1077_s6, 16 }
  0x17   :  { %p672_p8 = scmp.ne.s32.totalorder %s1077_s6, %s671_s15  ;;  %p675_p9 = scmp.lt.u32.totalorder %s671_s15, %s1077_s6 }
  0x19   :  { %p677_p10 = pnand %p675_p9, %p672_p8 }
  0x1b   :  { %680 = shalt.err (!%p677_p10)
}
  0x1c   :  { %s681_s22 = scalar_lea.vmem %s68_s20, 16  ;;  %s685_s23 = scalar_lea.vmem %s68_s20, 32 }
  0x1d   :  { %p682_p11 = scmp.ne.s32.totalorder %s68_s20, %s681_s22  ;;  %p686_p12 = scmp.lt.s32.totalorder %s68_s20, %s68_s20 }
  0x1e   :  { %p687_p13 = scmp.lt.s32.totalorder %s685_s23, %s681_s22 }
  0x20   :  { %p688_p0 = por %p687_p13, %p686_p12 }
  0x22   :  { %p689_p1 = pnand %p688_p0, %p682_p11 }
  0x24   :  { %692 = shalt.err (!%p689_p1)
}
  0x25   :  { %70 = dma.hbm_to_vmem [thread:$0]  %s1077_s6, 16, %s68_s20, [#allocation9]  }
  0x26   :  { %s837_s24 = smov [#allocation11]   ;;  %s838_s26 = smov [#allocation2]  }
  0x27   :  { %s88_s25 = sshll.u32 %s837_s24, 4  ;;  %s32_s27 = sshll.u32 %s838_s26, 4  ;;  %s89_s25 = int_to_ptr.vmem [resolvable:$true] %s88_s25  ;;  %s931_s27 = int_to_ptr.vmem [resolvable:$true] %s32_s27 }
  0x28   :  { %s693_s30 = scalar_lea.hbm %s1080_s9, 512 }
  0x29   :  { %p694_p2 = scmp.ne.s32.totalorder %s1080_s9, %s693_s30  ;;  %p697_p3 = scmp.lt.u32.totalorder %s693_s30, %s1080_s9 }
  0x2b   :  { %p699_p4 = pnand %p697_p3, %p694_p2 }
  0x2d   :  { %702 = shalt.err (!%p699_p4)
}
  0x2e   :  { %s703_s6 = scalar_lea.vmem %s89_s25, 512  ;;  %p708_p6 = scmp.lt.s32.totalorder %s89_s25, %s89_s25 }
  0x2f   :  { %p704_p5 = scmp.ne.s32.totalorder %s89_s25, %s703_s6  ;;  %p709_p7 = scmp.lt.s32.totalorder %s703_s6, %s703_s6 }
  0x31   :  { %p710_p8 = por %p709_p7, %p708_p6 }
  0x33   :  { %p711_p9 = pnand %p710_p8, %p704_p5 }
  0x35   :  { %714 = shalt.err (!%p711_p9)
}
  0x36   :  { %s839_s20 = smov 64   ;;  %s840_s16 = smov 4  }
  0x37   :  { %94 = dma.hbm_to_vmem [thread:$0]  %s1080_s9, 512, %s89_s25, [#allocation12], %s839_s20, %s839_s20, %s840_s16  }
  0x38   :  { %s715_s23 = scalar_lea.hbm %s1074_s3, 256 }
  0x39   :  { %p716_p10 = scmp.ne.s32.totalorder %s1074_s3, %s715_s23  ;;  %p719_p11 = scmp.lt.u32.totalorder %s715_s23, %s1074_s3 }
  0x3b   :  { %p721_p12 = pnand %p719_p11, %p716_p10 }
  0x3d   :  { %724 = shalt.err (!%p721_p12)
}
  0x3e   :  { %s725_s28 = scalar_lea.vmem %s931_s27, 256  ;;  %p730_p0 = scmp.lt.s32.totalorder %s931_s27, %s931_s27 }
  0x3f   :  { %p726_p13 = scmp.ne.s32.totalorder %s931_s27, %s725_s28  ;;  %p731_p1 = scmp.lt.s32.totalorder %s725_s28, %s725_s28 }
  0x41   :  { %p732_p2 = por %p731_p1, %p730_p0 }
  0x43   :  { %p733_p3 = pnand %p732_p2, %p726_p13 }
  0x45   :  { %736 = shalt.err (!%p733_p3)
}
  0x46   :  { %38 = dma.hbm_to_vmem [thread:$0]  %s1074_s3, 256, %s931_s27, [#allocation3], %s839_s20, %s839_s20, %s840_s16  }
  0x47   :  { %s841_s29 = smov [#allocation7]   ;;  %s842_s12 = smov [#allocation10]  }
  0x48   :  { %s54_s30 = sshll.u32 %s841_s29, 4  ;;  %s79_s13 = sshll.u32 %s842_s12, 4  ;;  %s55_s30 = int_to_ptr.vmem [resolvable:$true] %s54_s30  ;;  %s80_s13 = int_to_ptr.vmem [resolvable:$true] %s79_s13 }
  0x49   :  { %s737_s6 = scalar_lea.hbm %s1076_s5, 256 }
  0x4a   :  { %p738_p4 = scmp.ne.s32.totalorder %s1076_s5, %s737_s6  ;;  %p741_p5 = scmp.lt.u32.totalorder %s737_s6, %s1076_s5 }
  0x4c   :  { %p743_p6 = pnand %p741_p5, %p738_p4 }
  0x4e   :  { %746 = shalt.err (!%p743_p6)
}
  0x4f   :  { %s747_s3 = scalar_lea.vmem %s55_s30, 256  ;;  %p752_p8 = scmp.lt.s32.totalorder %s55_s30, %s55_s30 }
  0x50   :  { %p748_p7 = scmp.ne.s32.totalorder %s55_s30, %s747_s3  ;;  %p753_p9 = scmp.lt.s32.totalorder %s747_s3, %s747_s3 }
  0x52   :  { %p754_p10 = por %p753_p9, %p752_p8 }
  0x54   :  { %p755_p11 = pnand %p754_p10, %p748_p7 }
  0x56   :  { %758 = shalt.err (!%p755_p11)
}
  0x57   :  { %60 = dma.hbm_to_vmem [thread:$0]  %s1076_s5, 256, %s55_s30, [#allocation6], %s839_s20, %s839_s20, %s840_s16  }
  0x58   :  { %s759_s24 = scalar_lea.hbm %s1079_s8, 16 }
  0x59   :  { %p760_p12 = scmp.ne.s32.totalorder %s1079_s8, %s759_s24  ;;  %p763_p13 = scmp.lt.u32.totalorder %s759_s24, %s1079_s8 }
  0x5b   :  { %p765_p0 = pnand %p763_p13, %p760_p12 }
  0x5d   :  { %768 = shalt.err (!%p765_p0)
}
  0x5e   :  { %s769_s29 = scalar_lea.vmem %s80_s13, 16  ;;  %s773_s12 = scalar_lea.vmem %s80_s13, 32 }
  0x5f   :  { %p770_p1 = scmp.ne.s32.totalorder %s80_s13, %s769_s29  ;;  %p774_p2 = scmp.lt.s32.totalorder %s80_s13, %s80_s13 }
  0x60   :  { %p775_p3 = scmp.lt.s32.totalorder %s773_s12, %s769_s29 }
  0x62   :  { %p776_p4 = por %p775_p3, %p774_p2 }
  0x64   :  { %p777_p5 = pnand %p776_p4, %p770_p1 }
  0x66   :  { %780 = shalt.err (!%p777_p5)
}
  0x67   :  { %82 = dma.hbm_to_vmem [thread:$0]  %s1079_s8, 16, %s80_s13, [#allocation9]  }
  0x68   :  { %s843_s16 = smov [#allocation13]   ;;  %s781_s6 = scalar_lea.hbm %s1081_s10, 16 }
  0x69   :  { %s101_s30 = sshll.u32 %s843_s16, 4  ;;  %p782_p6 = scmp.ne.s32.totalorder %s1081_s10, %s781_s6  ;;  %s102_s30 = int_to_ptr.vmem [resolvable:$true] %s101_s30 }
  0x6a   :  { %p785_p7 = scmp.lt.u32.totalorder %s781_s6, %s1081_s10 }
  0x6c   :  { %p787_p8 = pnand %p785_p7, %p782_p6 }
  0x6e   :  { %790 = shalt.err (!%p787_p8)
}
  0x6f   :  { %s791_s3 = scalar_lea.vmem %s102_s30, 16  ;;  %s795_s8 = scalar_lea.vmem %s102_s30, 32 }
  0x70   :  { %p792_p9 = scmp.ne.s32.totalorder %s102_s30, %s791_s3  ;;  %p796_p10 = scmp.lt.s32.totalorder %s102_s30, %s102_s30 }
  0x71   :  { %p797_p11 = scmp.lt.s32.totalorder %s795_s8, %s791_s3 }
  0x73   :  { %p798_p12 = por %p797_p11, %p796_p10 }
  0x75   :  { %p799_p13 = pnand %p798_p12, %p792_p9 }
  0x77   :  { %802 = shalt.err (!%p799_p13)
}
  0x78   :  { %104 = dma.hbm_to_vmem [thread:$0]  %s1081_s10, 16, %s102_s30, [#allocation12]  }
  0x79   :  { %825 = dma.done.wait [#allocation3], 256  }
  0x7a   :  { %826 = vsyncadd [#allocation3], 4294967040 }
  0x7b   :  { %827 = dma.done.wait [#allocation6], 272  }
  0x7c   :  { %828 = vsyncadd [#allocation6], 4294967024 }
  0x7d   :  { %829 = dma.done.wait [#allocation9], 32  }
  0x7e   :  { %830 = vsyncadd [#allocation9], 4294967264 }
  0x7f   :  { %831 = dma.done.wait [#allocation12], 528  }
  0x80   :  { %832 = vsyncadd [#allocation12], 4294966768  ;;  %v844_v0 = vmov 0.0   ;;  %vm845_vm0 = vmmov 0   ;;  %v631_v1 = vld [vmem:[%s1072_s1] sm:$0xff]   ;;  %vm152_vm1 = vcmask 1043456  }
  0x81   :  { %571 = vmatprep.subr.bf16.mxu0 %v844_v0  ;;  %575 = vmatprep.mubr.msk.bf16.mxu0 %vm845_vm0, %v844_v0  ;;  %v632_v2 = vld [vmem:[%s1072_s1 + $0x8] ss:$0 sps:$4 sm:$0xff]   ;;  %v127_v3 = vld [vmem:[%s1071_s0] sm:$0xff]  ;;  %vm148_vm2 = vcmask 195584   ;;  %v635_v8 = vld [vmem:[#allocation7] sm:$0xff]   ;;  %vm221_vm3 = vcmask 261120  }
  0x82   :  { %579 = vmatprep.subr.bf16.mxu1 %v844_v0  ;;  %583 = vmatprep.mubr.msk.bf16.mxu1 %vm845_vm0, %v844_v0  ;;  %v154_v4 = vsel %vm152_vm1, %v632_v2, 0  ;;  %v128_v5 = vpack.c.bf16 %v127_v3, %v127_v3  ;;  %v633_v6 = vld [vmem:[#allocation2] sm:$0xff]   ;;  %v634_v7 = vld [vmem:[#allocation2 + $0x8] sm:$0xff]   ;;  %v531_v20 = vld [vmem:[#allocation5] ss:$0 sm:$0xff]  ;;  %vm374_vm4 = vcmask 523264  }
  0x83   :  { %572 = vmatpush3.bf16.msra.mxu0 %v631_v1  ;;  %580 = vmatpush3.bf16.msra.mxu1 %v633_v6  ;;  %v527_v9 = vld [vmem:[%s1073_s2] ss:$0 sm:$0xff]  ;;  %v638_v19 = vld [vmem:[%s1078_s7 + $0x8] sm:$0xff]   ;;  %v639_v28 = vld [vmem:[%s1078_s7 + $0x10] sm:$0xff]  }
  0x84   :  { %573 = vmatprep.subr.bf16.mxu0 %v844_v0  ;;  %581 = vmatprep.subr.bf16.mxu1 %v844_v0  ;;  %v636_v17 = vld [vmem:[#allocation7 + $0x8] sm:$0xff]   ;;  %v641_v30 = vld [vmem:[#allocation11] sm:$0xff]   ;;  %v642_v31 = vld [vmem:[#allocation11 + $0x8] sm:$0xff]  }
  0x85   :  { %v637_v18 = vld [vmem:[%s1078_s7] sm:$0xff]   ;;  %v640_v29 = vld [vmem:[%s1078_s7 + $0x18] sm:$0xff]   ;;  %s846_s7 = smov [#allocation14]  }
  0x86   :  { %v535_v32 = vld [vmem:[#allocation8] ss:$0 sm:$0xff]  ;;  %v643_v40 = vld [vmem:[#allocation11 + $0x10] sm:$0xff]   ;;  %v539_v42 = vld [vmem:[#allocation10] ss:$0 sm:$0xff]  ;;  %s515_s16 = sshll.u32 %s846_s7, 4  ;;  %s516_s16 = int_to_ptr.vmem [resolvable:$true] %s515_s16 }
  0x87   :  { %574 = vmatpush3.bf16.msra.mxu0 %v154_v4  ;;  %582 = vmatpush3.bf16.msra.mxu1 %v634_v7  ;;  %v644_v41 = vld [vmem:[#allocation11 + $0x18] sm:$0xff]   ;;  %v545_v50 = vld [vmem:[#allocation13] ss:$0 sm:$0xff]  ;;  %s803_s30 = scalar_lea.vmem %s516_s16, 128  ;;  %p808_p1 = scmp.lt.s32.totalorder %s516_s16, %s516_s16 }
  0x88   :  { %587 = vmatprep.subr.bf16.mxu0 %v844_v0  ;;  %595 = vmatprep.subr.bf16.mxu1 %v844_v0  ;;  %p804_p0 = scmp.ne.s32.totalorder %s516_s16, %s803_s30  ;;  %p809_p2 = scmp.lt.s32.totalorder %s803_s30, %s803_s30 }
  0x8a   :  { %576 = vmatmul.mubr.msk.bf16.vlgmr.msra.gmra.mrb[0].mxu0 %vm148_vm2, %v128_v5  ;;  %p810_p3 = por %p809_p2, %p808_p1 }
  0x8b   :  { %591 = vmatprep.mubr.msk.bf16.mxu0 %vm845_vm0, %v844_v0  ;;  %588 = vmatpush3.bf16.msra.mxu0 %v635_v8 }
  0x8c   :  { %589 = vmatprep.subr.bf16.mxu0 %v844_v0  ;;  %p811_p4 = pnand %p810_p3, %p804_p0 }
  0x8f   :  { %590 = vmatpush3.bf16.msra.mxu0 %v636_v17 }
  0x90   :  { %607 = vmatprep.subr.bf16.mxu0 %v844_v0 }
 0x15d   :  { %v190_v10 = vpop.f32.mrb[0].mxu0 }
 0x15e   :  { %v191_v11 = vadd.f32 %v527_v9, %v190_v10  ;;  %v577_v12 = vpop.f32.mrb[1].mxu0 }
 0x15f   :  { %v193_v13 = vpop.f32.mrb[2].mxu0 }
 0x160   :  { %v196_v14 = vmax.f32 %v191_v11, 0.0  ;;  %v578_v15 = vpop.f32.mrb[3].mxu0 }
 0x162   :  { %v197_v16 = vpack.c.bf16 %v196_v14, %v196_v14 }
 0x164   :  { %584 = vmatmul.mubr.msk.bf16.vlgmr.msra.gmra.mrb[0].mxu1 %vm221_vm3, %v197_v16 }
 0x165   :  { %603 = vmatprep.mubr.msk.bf16.mxu1 %vm845_vm0, %v844_v0  ;;  %596 = vmatpush3.bf16.msra.mxu1 %v637_v18 }
 0x166   :  { %597 = vmatprep.subr.bf16.mxu1 %v844_v0 }
 0x169   :  { %598 = vmatpush3.bf16.msra.mxu1 %v638_v19 }
 0x16a   :  { %599 = vmatprep.subr.bf16.mxu1 %v844_v0 }
 0x16d   :  { %600 = vmatpush3.bf16.msra.mxu1 %v639_v28 }
 0x16e   :  { %601 = vmatprep.subr.bf16.mxu1 %v844_v0 }
 0x171   :  { %602 = vmatpush3.bf16.msra.mxu1 %v640_v29 }
 0x237   :  { %v259_v21 = vpop.f32.mrb[0].mxu1 }
 0x238   :  { %v260_v22 = vadd.f32 %v531_v20, %v259_v21  ;;  %v585_v23 = vpop.f32.mrb[1].mxu1 }
 0x239   :  { %v262_v24 = vpop.f32.mrb[2].mxu1 }
 0x23a   :  { %v265_v25 = vmax.f32 %v260_v22, 0.0  ;;  %v586_v26 = vpop.f32.mrb[3].mxu1 }
 0x23c   :  { %v266_v27 = vpack.c.bf16 %v265_v25, %v265_v25 }
 0x23e   :  { %592 = vmatmul.mubr.msk.bf16.vlgmr.msra.gmra.mrb[4].mxu0 %vm221_vm3, %v266_v27 }
 0x23f   :  { %615 = vmatprep.mubr.msk.bf16.mxu0 %vm845_vm0, %v844_v0  ;;  %608 = vmatpush3.bf16.msra.mxu0 %v641_v30 }
 0x240   :  { %609 = vmatprep.subr.bf16.mxu0 %v844_v0 }
 0x243   :  { %610 = vmatpush3.bf16.msra.mxu0 %v642_v31 }
 0x244   :  { %611 = vmatprep.subr.bf16.mxu0 %v844_v0 }
 0x247   :  { %612 = vmatpush3.bf16.msra.mxu0 %v643_v40 }
 0x248   :  { %613 = vmatprep.subr.bf16.mxu0 %v844_v0 }
 0x24b   :  { %614 = vmatpush3.bf16.msra.mxu0 %v644_v41 }
 0x311   :  { %v327_v33 = vpop.f32.mrb[4].mxu0 }
 0x312   :  { %v328_v34 = vadd.f32 %v535_v32, %v327_v33  ;;  %v593_v35 = vpop.f32.mrb[5].mxu0 }
 0x313   :  { %v330_v36 = vpop.f32.mrb[6].mxu0 }
 0x314   :  { %v333_v37 = vmax.f32 %v328_v34, 0.0  ;;  %v594_v38 = vpop.f32.mrb[7].mxu0 }
 0x316   :  { %v334_v39 = vpack.c.bf16 %v333_v37, %v333_v37 }
 0x318   :  { %604 = vmatmul.mubr.msk.bf16.vlgmr.msra.gmra.mrb[4].mxu1 %vm374_vm4, %v334_v39 }
 0x3eb   :  { %v412_v43 = vpop.f32.mrb[4].mxu1 }
 0x3ec   :  { %v413_v44 = vadd.f32 %v539_v42, %v412_v43  ;;  %v605_v45 = vpop.f32.mrb[5].mxu1 }
 0x3ed   :  { %v415_v46 = vpop.f32.mrb[6].mxu1 }
 0x3ee   :  { %v418_v47 = vmax.f32 %v413_v44, 0.0  ;;  %v606_v48 = vpop.f32.mrb[7].mxu1 }
 0x3f0   :  { %v419_v49 = vpack.c.bf16 %v418_v47, %v418_v47 }
 0x3f2   :  { %616 = vmatmul.mubr.msk.bf16.vlgmr.msra.gmra.mrb[8].mxu0 %vm374_vm4, %v419_v49 }
 0x4c5   :  { %v496_v51 = vpop.f32.mrb[8].mxu0 }
 0x4c6   :  { %v497_v52 = vadd.f32 %v545_v50, %v496_v51  ;;  %v617_v53 = vpop.f32.mrb[9].mxu0 }
 0x4c7   :  { %v499_v54 = vpop.f32.mrb[10].mxu0 }
 0x4c8   :  { %v551_v55 = vmul.f32 -1.442695, %v497_v52  ;;  %v618_v56 = vpop.f32.mrb[11].mxu0 }
 0x4ca   :  { %645 = vpow2.f32 %v551_v55 }
 0x4d4   :  { %v646_v57 = vpop.eup %645 }
 0x4d5   :  { %v505_v58 = vadd.f32 1.0, %v646_v57 }
 0x4d7   :  { %647 = vrcp.f32 %v505_v58 }
 0x4e1   :  { %v648_v59 = vpop.eup %647 }
 0x4e2   :  { %508 = vst [vmem:[#allocation14] sm:$0xff] %v648_v59 }
 0x4e3   :  { %814 = shalt.err (!%p811_p4)
}
 0x4e4   :  { %s815_s6 = scalar_lea.hbm %s1082_s11, 128 }
 0x4e5   :  { %p816_p5 = scmp.ne.s32.totalorder %s1082_s11, %s815_s6  ;;  %p819_p6 = scmp.lt.u32.totalorder %s815_s6, %s1082_s11 }
 0x4e7   :  { %p821_p7 = pnand %p819_p6, %p816_p5 }
 0x4e9   :  { %824 = shalt.err (!%p821_p7)
}
 0x4ea   :  { %518 = dma.vmem_to_hbm [thread:$0]  %s516_s16, 128, %s1082_s11, [#allocation4]  }
 0x4eb   :  { %833 = dma.done.wait [#allocation4], 128  }
 0x4ec   :  { %834 = vsyncadd [#allocation4], 4294967168 }
 0x4ed   :  { %522 = vsyncpa [#allocation3], 1 }
 0x4ee   :  { %523 = vsyncpa [#allocation6], 1 }
 0x4ef   :  { %524 = vsyncpa [#allocation9], 1 }
 0x4f0   :  { %525 = vsyncpa [#allocation12], 1 }
 0x4f1   :  { %526 = vsyncpa [#allocation4], 1 }

</bundles_post_ra>
